<compile_context>
chip_gen: v7x
topology: tpu7x:2x2x1
jax: 0.10.0
libtpu: 0.0.40
codegen_flags: <defaults>
</compile_context>

<pallas_src>
import jax
import jax.numpy as jnp
from jax.experimental import pallas as pl
from jax.experimental.pallas import tpu as pltpu

_LANES = 128


def _gan_activation_kernel(v_ref, o_ref):
    # Elementwise stable log-sigmoid: -log(1 + exp(-v))
    #   v >= 0:  -log1p(exp(-v))
    #   v <  0:  v - log1p(exp(v))
    # Combined:  where(v >= 0, 0, v) - log1p(exp(-|v|))
    v = v_ref[...].astype(jnp.float32)
    out = jnp.where(v >= 0, 0.0, v) - jnp.log1p(jnp.exp(-jnp.abs(v)))
    o_ref[...] = out.astype(o_ref.dtype)


def fdiv_loss_critic_gan(v: jax.Array, *, tile_rows: int = 1024) -> jax.Array:
    """Apply FDivLossCritic('GAN') forward to an arbitrary-shaped array."""
    orig_shape = v.shape
    orig_dtype = v.dtype
    total = v.size

    flat = jnp.ravel(v)
    pad = (-total) % _LANES  # at most 127 elements, only for ragged lane counts
    if pad:
        flat = jnp.pad(flat, (0, pad))
    rows = (total + pad) // _LANES
    slab = flat.reshape(rows, _LANES)

    # Keep tile a multiple of 8 sublanes and no larger than needed.
    tile_rows = min(tile_rows, ((rows + 7) // 8) * 8)
    grid = (pl.cdiv(rows, tile_rows),)

    itemsize = jnp.dtype(orig_dtype).itemsize
    cost = pl.CostEstimate(
        flops=4 * total,                 # abs/neg/select/sub on the VPU
        transcendentals=2 * total,       # exp + log1p per element (EUP)
        bytes_accessed=2 * total * itemsize,
    )

    out_slab = pl.pallas_call(
        _gan_activation_kernel,
        out_shape=jax.ShapeDtypeStruct((rows, _LANES), orig_dtype),
        grid_spec=pltpu.PrefetchScalarGridSpec(
            num_scalar_prefetch=0,
            grid=grid,
            in_specs=[pl.BlockSpec((tile_rows, _LANES), lambda i: (i, 0))],
            out_specs=pl.BlockSpec((tile_rows, _LANES), lambda i: (i, 0)),
        ),
        compiler_params=pltpu.CompilerParams(
            # "parallel" lets the grid shard across both TensorCores on v7x;
            # measured no-op on single-TC v5e/v6e.
            dimension_semantics=("parallel",),
        ),
        cost_estimate=cost,
        # NOTE: input_output_aliases={0: 0} would save an output allocation,
        # but it donates the caller's buffer — skipped to keep semantics safe.
    )(slab)

    out_flat = out_slab.reshape(-1)
    if pad:
        out_flat = out_flat[:total]
    return out_flat.reshape(orig_shape)


if __name__ == "__main__":
    key = jax.random.PRNGKey(0)
    # Small NCHW-shaped input consistent with a critic output map.
    x = jax.random.normal(key, (2, 4, 16, 16), dtype=jnp.float32)

    out = fdiv_loss_critic_gan(x)
    out = jax.block_until_ready(out)

    # Reference: the PyTorch module's formula (inputs are in the safe range,
    # so the naive form matches the stable form to fp tolerance).
    ref = -jnp.log(1.0 + jnp.exp(-x))
    assert out.shape == x.shape and out.dtype == x.dtype
    assert jnp.allclose(out, ref, atol=1e-6, rtol=1e-6)

    print("KERNEL_OK")
</pallas_src>

<mosaic_0001>
module attributes {stable_mosaic.version = 11 : i64} {
  func.func @_gan_activation_kernel(%arg0: i32, %arg1: memref<16x128xf32, #tpu.memory_space<vmem>>, %arg2: memref<16x128xf32, #tpu.memory_space<vmem>>) attributes {dimension_semantics = [#tpu.dimension_semantics<parallel>], iteration_bounds = array<i64: 1>, scalar_prefetch = 0 : i64, scratch_operands = 0 : i64, tpu.core_type = #tpu.core_type<tc>, window_params = [{transform_indices = @transform_0, window_bounds = array<i64: 16, 128>}, {transform_indices = @transform_1, window_bounds = array<i64: 16, 128>}]} {
    %c0 = arith.constant 0 : index
    %c0_0 = arith.constant 0 : index
    %0 = vector.load %arg1[%c0, %c0_0] : memref<16x128xf32, #tpu.memory_space<vmem>>, vector<16x128xf32>
    %cst = arith.constant 0.000000e+00 : f32
    %1 = vector.broadcast %cst : f32 to vector<16x128xf32>
    %2 = arith.cmpf oge, %0, %1 : vector<16x128xf32>
    %cst_1 = arith.constant 0.000000e+00 : f32
    %3 = vector.broadcast %cst_1 : f32 to vector<16x128xf32>
    %4 = arith.select %2, %3, %0 : vector<16x128xi1>, vector<16x128xf32>
    %5 = math.absf %0 : vector<16x128xf32>
    %cst_2 = arith.constant 0.000000e+00 : f32
    %6 = vector.broadcast %cst_2 : f32 to vector<16x128xf32>
    %7 = arith.subf %6, %5 : vector<16x128xf32>
    %8 = math.exp %7 : vector<16x128xf32>
    %9 = math.log1p %8 : vector<16x128xf32>
    %10 = arith.subf %4, %9 : vector<16x128xf32>
    %c0_3 = arith.constant 0 : index
    %c0_4 = arith.constant 0 : index
    %11 = vector.load %arg2[%c0_3, %c0_4] : memref<16x128xf32, #tpu.memory_space<vmem>>, vector<16x128xf32>
    tpu.vector_store %arg2[%c0_3, %c0_4], %10 {strides = array<i32>} : memref<16x128xf32, #tpu.memory_space<vmem>>, vector<16x128xf32>,
    return
  }
  func.func @transform_0(%arg0: i32) -> (i32, i32) {
    %c0_i32 = arith.constant 0 : i32
    %c0_i32_0 = arith.constant 0 : i32
    return %arg0, %c0_i32 : i32, i32
  }
  func.func @transform_1(%arg0: i32) -> (i32, i32) {
    %c0_i32 = arith.constant 0 : i32
    %c0_i32_0 = arith.constant 0 : i32
    return %arg0, %c0_i32 : i32, i32
  }
}

</mosaic_0001>

<bundles_post_ra>
// kernel: tpu_custom_call.1
= control target key start
LH: loop header
LB: loop body
LE: loop exit
PB: predicated region body
PF: predicated region fallthrough
CT: control target
= control target key end

     0   :  { %6 = vsyncpa [#allocation3], 0  ;;  %s180_s0 = inlined_call_operand.hbm [shape: f32[16,128], index: 0, kind: input, shape index: {}]   ;;  %s181_s1 = inlined_call_operand.hbm [shape: f32[16,128], index: 1, kind: output, shape index: {}]  }
   0x1   :  { %7 = vsyncpa [#allocation4], 0  ;;  %s136_s6 = smov [#allocation2]   ;;  %s88_s10 = scalar_lea.hbm %s180_s0, 256 }
   0x2   :  { %s13_s7 = sshll.u32 %s136_s6, 4  ;;  %p89_p0 = scmp.ne.s32.totalorder %s180_s0, %s88_s10  ;;  %s14_s7 = int_to_ptr.vmem [resolvable:$true] %s13_s7 }
   0x3   :  { %p92_p1 = scmp.lt.u32.totalorder %s88_s10, %s180_s0 }
   0x5   :  { %p94_p2 = pnand %p92_p1, %p89_p0 }
   0x7   :  { %97 = shalt.err (!%p94_p2)
}
   0x8   :  { %s98_s15 = scalar_lea.vmem %s14_s7, 256  ;;  %p103_p4 = scmp.lt.s32.totalorder %s14_s7, %s14_s7 }
   0x9   :  { %p99_p3 = scmp.ne.s32.totalorder %s14_s7, %s98_s15  ;;  %p104_p5 = scmp.lt.s32.totalorder %s98_s15, %s98_s15 }
   0xb   :  { %p105_p6 = por %p104_p5, %p103_p4 }
   0xd   :  { %p106_p7 = pnand %p105_p6, %p99_p3 }
   0xf   :  { %109 = shalt.err (!%p106_p7)
}
  0x10   :  { %s137_s16 = smov 128   ;;  %s138_s17 = smov 8  }
  0x11   :  { %19 = dma.hbm_to_vmem [thread:$0]  %s180_s0, 256, %s14_s7, [#allocation3], %s137_s16, %s137_s16, %s138_s17  }
  0x12   :  { %132 = dma.done.wait [#allocation3], 256  }
  0x13   :  { %133 = vsyncadd [#allocation3], 4294967040  ;;  %v23_v0 = vld [vmem:[#allocation2] sm:$0xff]  ;;  %v24_v1 = vld [vmem:[#allocation2 + $0x8] sm:$0xff]  ;;  %s139_s0 = smov [#allocation5]  }
  0x14   :  { %v29_v2 = vand.u32 2147483647, %v23_v0  ;;  %v30_v3 = vand.u32 2147483647, %v24_v1  ;;  %vm25_vm0 = vcmp.ge.f32.partialorder %v23_v0, 0.0  ;;  %vm26_vm1 = vcmp.ge.f32.partialorder %v24_v1, 0.0 }
  0x15   :  { %v27_v22 = vsel %vm25_vm0, 0.0, %v23_v0  ;;  %v28_v24 = vsel %vm26_vm1, 0.0, %v24_v1  ;;  %s64_s20 = sshll.u32 %s139_s0, 4  ;;  %s65_s20 = int_to_ptr.vmem [resolvable:$true] %s64_s20 }
  0x16   :  { %v31_v4 = vsub.f32 0.0, %v29_v2  ;;  %v32_v5 = vsub.f32 0.0, %v30_v3  ;;  %s110_s21 = scalar_lea.vmem %s65_s20, 256  ;;  %p115_p9 = scmp.lt.s32.totalorder %s65_s20, %s65_s20 }
  0x17   :  { %p111_p8 = scmp.ne.s32.totalorder %s65_s20, %s110_s21  ;;  %p116_p10 = scmp.lt.s32.totalorder %s110_s21, %s110_s21 }
  0x18   :  { %v33_v6 = vmul.f32 1.442695, %v31_v4  ;;  %v35_v7 = vmul.f32 1.442695, %v32_v5 }
  0x19   :  { %p117_p11 = por %p116_p10, %p115_p9 }
  0x1a   :  { %80 = vpow2.f32 %v33_v6 }
  0x1b   :  { %82 = vpow2.f32 %v35_v7  ;;  %p118_p12 = pnand %p117_p11, %p111_p8 }
  0x24   :  { %v81_v8 = vpop.eup %80 }
  0x25   :  { %v83_v9 = vpop.eup %82  ;;  %v37_v10 = vadd.f32 1.0, %v81_v8  ;;  %v40_v12 = vmul.f32 -0.5, %v81_v8  ;;  %v43_v15 = vand.u32 2147483647, %v81_v8 }
  0x26   :  { %v46_v11 = vadd.f32 1.0, %v83_v9  ;;  %v49_v13 = vmul.f32 -0.5, %v83_v9  ;;  %v52_v17 = vand.u32 2147483647, %v83_v9 }
  0x27   :  { %84 = vlog2.f32 %v37_v10  ;;  %v41_v14 = vadd.f32 1.0, %v40_v12  ;;  %vm44_vm2 = vcmp.lt.f32.partialorder %v43_v15, 0.0004427343 }
  0x28   :  { %86 = vlog2.f32 %v46_v11  ;;  %v50_v16 = vadd.f32 1.0, %v49_v13  ;;  %vm53_vm3 = vcmp.lt.f32.partialorder %v52_v17, 0.0004427343 }
  0x29   :  { %v42_v18 = vmul.f32 %v81_v8, %v41_v14 }
  0x2a   :  { %v51_v20 = vmul.f32 %v83_v9, %v50_v16 }
  0x31   :  { %v85_v19 = vpop.eup %84 }
  0x32   :  { %v87_v21 = vpop.eup %86  ;;  %v39_v23 = vmul.f32 0.6931472, %v85_v19 }
  0x33   :  { %v48_v25 = vmul.f32 0.6931472, %v87_v21 }
  0x34   :  { %v45_v26 = vsel %vm44_vm2, %v42_v18, %v39_v23 }
  0x35   :  { %v55_v27 = vsub.f32 %v27_v22, %v45_v26  ;;  %v54_v28 = vsel %vm53_vm3, %v51_v20, %v48_v25 }
  0x36   :  { %v56_v29 = vsub.f32 %v28_v24, %v54_v28 }
  0x37   :  { %57 = vst [vmem:[#allocation5] sm:$0xff] %v55_v27 }
  0x38   :  { %58 = vst [vmem:[#allocation5 + $0x8] sm:$0xff] %v56_v29 }
  0x39   :  { %121 = shalt.err (!%p118_p12)
}
  0x3a   :  { %s122_s24 = scalar_lea.hbm %s181_s1, 256 }
  0x3b   :  { %p123_p13 = scmp.ne.s32.totalorder %s181_s1, %s122_s24  ;;  %p126_p0 = scmp.lt.u32.totalorder %s122_s24, %s181_s1 }
  0x3d   :  { %p128_p1 = pnand %p126_p0, %p123_p13 }
  0x3f   :  { %131 = shalt.err (!%p128_p1)
}
  0x40   :  { %70 = dma.vmem_to_hbm [thread:$0]  %s65_s20, 256, %s181_s1, [#allocation4], %s137_s16, %s137_s16, %s138_s17  }
  0x41   :  { %134 = dma.done.wait [#allocation4], 256  }
  0x42   :  { %135 = vsyncadd [#allocation4], 4294967040 }
  0x43   :  { %74 = vsyncpa [#allocation3], 1 }
  0x44   :  { %75 = vsyncpa [#allocation4], 1 }

</bundles_post_ra>
